<compile_context>
chip_gen: v7x
topology: tpu7x:2x2x1
jax: 0.10.0
libtpu: 0.0.40
codegen_flags: <defaults>
</compile_context>

<pallas_src>
import functools

import jax
import jax.numpy as jnp
from jax import lax
from jax.experimental import pallas as pl
from jax.experimental.pallas import tpu as pltpu


# --------------------------------------------------------------------------------------
# Shared conv helper: K accumulated MXU matmuls for one batch tile (no im2col concat).
# --------------------------------------------------------------------------------------
def _conv_accumulate(x_ref, w_ref, *, K, C_in, stride, L_out):
    # x_ref: (bn, L_pad, C_in) block   w_ref: (K*C_in, C_out) block (row = t*C_in + ci)
    bn = x_ref.shape[0]
    acc = None
    for t in range(K):  # K is a small static int -> fully unrolled at trace time
        if stride == 1:
            xt = x_ref[:, pl.ds(t, L_out), :]                       # (bn, L_out, C_in)
        else:
            # Sublane-strided load: avoids the oversized copy + reshape-drop.
            xt = x_ref[:, pl.ds(t, L_out, stride=stride), :]
        xt = xt.reshape(bn * L_out, C_in)
        wt = w_ref[pl.ds(t * C_in, C_in), :]                        # (C_in, C_out)
        d = jnp.dot(xt, wt, preferred_element_type=jnp.float32)
        acc = d if acc is None else acc + d
    return acc                                                      # (bn*L_out, C_out) f32


# --------------------------------------------------------------------------------------
# Pass 1: conv + per-tile channel partials (sum, sum-of-squares) for global BN stats.
# --------------------------------------------------------------------------------------
def _conv_stats_kernel(x_ref, w_ref, stats_ref, *, K, C_in, stride, L_out):
    acc = _conv_accumulate(x_ref, w_ref, K=K, C_in=C_in, stride=stride, L_out=L_out)
    s = jnp.sum(acc, axis=0, keepdims=True)                         # (1, C_out)
    ss = jnp.sum(acc * acc, axis=0, keepdims=True)                  # (1, C_out)
    # Single flattened lane-row store per tile.
    stats_ref[...] = jnp.concatenate([s, ss], axis=-1).reshape(stats_ref.shape)


# --------------------------------------------------------------------------------------
# Pass 2: conv (recomputed) + folded-BN affine + exact Mish.
# --------------------------------------------------------------------------------------
def _conv_bn_mish_kernel(x_ref, w_ref, scale_ref, shift_ref, o_ref, *, K, C_in, stride, L_out):
    acc = _conv_accumulate(x_ref, w_ref, K=K, C_in=C_in, stride=stride, L_out=L_out)
    y = acc * scale_ref[...] + shift_ref[...]                        # (bn*L_out, C_out) f32

    # Exact Mish: y * tanh(softplus(y)), with an overflow-safe softplus.
    sp = jnp.maximum(y, 0.0) + jnp.log1p(jnp.exp(-jnp.abs(y)))
    m = y * jnp.tanh(sp)

    # o_ref block is either (bn, L_out, C_out) (trivial reshape) or the lane-dense
    # flattened (1, bn, L_out*C_out) layout — same store code for both.
    o_ref[...] = m.reshape(o_ref.shape).astype(o_ref.dtype)


# --------------------------------------------------------------------------------------
# batch_block auto-selection.
# --------------------------------------------------------------------------------------
def _pick_batch_block(N, L_out, tile_bytes, vmem_budget, target_m=1024):
    divisors = [d for d in range(1, N + 1) if N % d == 0]
    feasible = [d for d in divisors if tile_bytes(d) <= vmem_budget] or [1]
    # Keep >= 2 grid steps so the "parallel" axis can split across v7x's two TensorCores.
    preferred = [d for d in feasible if N // d >= 2] or feasible
    under = [d for d in preferred if d * L_out <= target_m]
    return max(under) if under else min(preferred)


# --------------------------------------------------------------------------------------
# Wrapper
# --------------------------------------------------------------------------------------
def conv_bn_mish(x_ncl, weight, gamma, beta, *, stride=1, eps=1e-5,
                 mxu_dtype=jnp.float32, batch_block=None):
    """x_ncl: (N, C_in, L); weight: (C_out, C_in, K); gamma/beta: (C_out,).
    Returns (N, C_out, L_out) == PyTorch Conv1d(pad=K//2, bias=False) + BN(train) + Mish.

    mxu_dtype: jnp.bfloat16 halves MXU issue and x/w HBM+VMEM bytes (f32 accumulation is
    kept); default float32 preserves the PyTorch module's numerics exactly.
    """
    N, C_in, L = x_ncl.shape
    C_out, _, K = weight.shape
    pad = K // 2
    L_out = (L + 2 * pad - K) // stride + 1
    L_pad = (K - 1) + L_out * stride            # exact span the kernel reads per batch row
    F = L_out * C_out
    itemsize = jnp.dtype(mxu_dtype).itemsize

    # Per-tile VMEM estimate for pass 2 (the larger pass): double-buffered x/w/out blocks,
    # f32 accumulator + one live tap slice, 1.5x slack for compiler temporaries.
    def _tile_bytes(bn):
        x_blk = bn * L_pad * C_in * itemsize
        w_blk = K * C_in * C_out * itemsize
        out_blk = bn * F * 4
        acc = bn * L_out * C_out * 4
        taps = bn * L_out * C_in * itemsize
        return int(1.5 * (2 * (x_blk + w_blk + out_blk) + acc + taps))

    # Conservative budget that fits v5e's 16 MiB scoped default and v7x's 64 MiB physical.
    vmem_budget = 12 * 1024 * 1024

    bn = batch_block if batch_block is not None else _pick_batch_block(
        N, L_out, _tile_bytes, vmem_budget)
    assert N % bn == 0, "batch_block must divide N"
    T = N // bn

    vmem_limit = min(max(2 * _tile_bytes(bn), 8 * 1024 * 1024), 32 * 1024 * 1024)
    cparams = pltpu.CompilerParams(dimension_semantics=("parallel",),
                                   vmem_limit_bytes=vmem_limit)

    # Layout: NCL -> NLC (channels on lanes for the matmul), pad L to exactly L_pad.
    # TODO(synk): do this transpose/pad in-kernel (XLU slot is idle) to save an HBM trip.
    x_nlc = jnp.transpose(x_ncl, (0, 2, 1)).astype(mxu_dtype)
    right = max(L_pad - (L + pad), 0)
    x_nlc = jnp.pad(x_nlc, ((0, 0), (pad, right), (0, 0)))[:, :L_pad, :]

    # weight (C_out, C_in, K) -> (K*C_in, C_out), row index = t*C_in + ci.
    w2d = jnp.transpose(weight, (2, 1, 0)).reshape(K * C_in, C_out).astype(mxu_dtype)

    kern_args = dict(K=K, C_in=C_in, stride=stride, L_out=L_out)

    # ---- pass 1: per-tile conv + (sum, sumsq) partials -------------------------------
    stats = pl.pallas_call(
        functools.partial(_conv_stats_kernel, **kern_args),
        out_shape=jax.ShapeDtypeStruct((T, 1, 2 * C_out), jnp.float32),
        grid=(T,),
        in_specs=[
            pl.BlockSpec((bn, L_pad, C_in), lambda i: (i, 0, 0)),
            pl.BlockSpec((K * C_in, C_out), lambda i: (0, 0)),
        ],
        out_specs=pl.BlockSpec((1, 1, 2 * C_out), lambda i: (i, 0, 0)),
        compiler_params=cparams,
    )(x_nlc, w2d)

    # ---- tiny global reduction -> fold BN into per-channel scale/shift (plain JAX) ---
    cnt = jnp.float32(N * L_out)
    s = jnp.sum(stats[:, 0, :C_out], axis=0)
    ss = jnp.sum(stats[:, 0, C_out:], axis=0)
    mean = s / cnt
    # Biased variance (PyTorch train-mode BN). E[x^2]-mean^2 in f32; fine unless the conv
    # output carries a huge DC offset relative to its spread.
    var = jnp.maximum(ss / cnt - mean * mean, 0.0)
    inv = lax.rsqrt(var + eps)
    g32 = gamma.astype(jnp.float32)
    b32 = beta.astype(jnp.float32)
    scale = (g32 * inv).reshape(1, C_out)
    shift = (b32 - mean * g32 * inv).reshape(1, C_out)

    # ---- pass 2: conv + affine + Mish -------------------------------------------------
    # Lane-dense flattened store only when it genuinely increases store width.
    flat_out = (F % 128 == 0) and (C_out % 128 != 0)
    if flat_out:
        out_shape = jax.ShapeDtypeStruct((T, bn, F), jnp.float32)
        out_spec = pl.BlockSpec((1, bn, F), lambda i: (i, 0, 0))
    else:
        out_shape = jax.ShapeDtypeStruct((N, L_out, C_out), jnp.float32)
        out_spec = pl.BlockSpec((bn, L_out, C_out), lambda i: (i, 0, 0))

    out_raw = pl.pallas_call(
        functools.partial(_conv_bn_mish_kernel, **kern_args),
        out_shape=out_shape,
        grid=(T,),
        in_specs=[
            pl.BlockSpec((bn, L_pad, C_in), lambda i: (i, 0, 0)),
            pl.BlockSpec((K * C_in, C_out), lambda i: (0, 0)),
            pl.BlockSpec((1, C_out), lambda i: (0, 0)),
            pl.BlockSpec((1, C_out), lambda i: (0, 0)),
        ],
        out_specs=out_spec,
        compiler_params=cparams,
    )(x_nlc, w2d, scale, shift)

    out_nlc = out_raw.reshape(N, L_out, C_out)
    return jnp.transpose(out_nlc, (0, 2, 1))


# --------------------------------------------------------------------------------------
# Pure-JAX reference mirroring the PyTorch forward (BN in training mode, exact Mish).
# --------------------------------------------------------------------------------------
def _reference(x_ncl, weight, gamma, beta, *, stride=1, eps=1e-5):
    K = weight.shape[2]
    pad = K // 2
    conv = lax.conv_general_dilated(
        x_ncl, weight,
        window_strides=(stride,),
        padding=[(pad, pad)],
        dimension_numbers=("NCH", "OIH", "NCH"),
    )
    mean = jnp.mean(conv, axis=(0, 2), keepdims=True)
    var = jnp.mean((conv - mean) ** 2, axis=(0, 2), keepdims=True)
    y = (conv - mean) * lax.rsqrt(var + eps)
    y = y * gamma.reshape(1, -1, 1) + beta.reshape(1, -1, 1)
    return y * jnp.tanh(jax.nn.softplus(y))


if __name__ == "__main__":
    # Shapes consistent with Conv(inp=4, oup=8, k=3, s=1) on a (2, 4, 16) input.
    N, C_in, C_out, L, K, S = 2, 4, 8, 16, 3, 1

    key = jax.random.PRNGKey(0)
    kx, kw = jax.random.split(key)
    x = jax.random.normal(kx, (N, C_in, L), dtype=jnp.float32)

    # Deterministic Conv1d-style weight init (kaiming-uniform bound, as in nn.Conv1d).
    bound = 1.0 / (C_in * K) ** 0.5
    weight = jax.random.uniform(
        kw, (C_out, C_in, K), dtype=jnp.float32, minval=-bound, maxval=bound
    )
    # BatchNorm1d default init: weight=1, bias=0.
    gamma = jnp.ones((C_out,), dtype=jnp.float32)
    beta = jnp.zeros((C_out,), dtype=jnp.float32)

    out = jax.block_until_ready(conv_bn_mish(x, weight, gamma, beta, stride=S))
    ref = jax.block_until_ready(_reference(x, weight, gamma, beta, stride=S))

    assert out.shape == (N, C_out, L)
    err = float(jnp.max(jnp.abs(out - ref)))
    assert err < 1e-4, f"mismatch vs reference: max abs err = {err}"

    print("KERNEL_OK")
</pallas_src>

<mosaic_0001>
module attributes {stable_mosaic.version = 11 : i64} {
  func.func @_conv_stats_kernel(%arg0: i32, %arg1: memref<1x18x4xf32, #tpu.memory_space<vmem>>, %arg2: memref<12x8xf32, #tpu.memory_space<vmem>>, %arg3: memref<1x1x16xf32, #tpu.memory_space<vmem>>) attributes {dimension_semantics = [#tpu.dimension_semantics<parallel>], iteration_bounds = array<i64: 2>, scalar_prefetch = 0 : i64, scratch_operands = 0 : i64, tpu.core_type = #tpu.core_type<tc>, window_params = [{transform_indices = @transform_0, window_bounds = array<i64: 1, 18, 4>}, {pipeline_mode = #tpu.pipeline_mode<synchronous>, transform_indices = @transform_1, window_bounds = array<i64: 12, 8>}, {transform_indices = @transform_2, window_bounds = array<i64: 1, 1, 16>}]} {
    %c0 = arith.constant 0 : index
    %c0_0 = arith.constant 0 : index
    %c0_1 = arith.constant 0 : index
    %0 = vector.load %arg1[%c0, %c0_0, %c0_1] : memref<1x18x4xf32, #tpu.memory_space<vmem>>, vector<1x16x4xf32>
    %1 = vector.shape_cast %0 : vector<1x16x4xf32> to vector<16x4xf32>
    %c0_2 = arith.constant 0 : index
    %c0_3 = arith.constant 0 : index
    %2 = vector.load %arg2[%c0_2, %c0_3] : memref<12x8xf32, #tpu.memory_space<vmem>>, vector<4x8xf32>
    %cst = arith.constant dense<0.000000e+00> : vector<16x8xf32>
    %3 = tpu.matmul %1, %2, %cst {dimension_numbers = #tpu.dot_dimension_numbers<[1], [0], [0], [1], [0, 0, 1, 1], [], []>} : vector<16x4xf32>, vector<4x8xf32>, vector<16x8xf32> -> vector<16x8xf32>
    %c0_4 = arith.constant 0 : index
    %c1 = arith.constant 1 : index
    %c0_5 = arith.constant 0 : index
    %4 = vector.load %arg1[%c0_4, %c1, %c0_5] : memref<1x18x4xf32, #tpu.memory_space<vmem>>, vector<1x16x4xf32>
    %5 = vector.shape_cast %4 : vector<1x16x4xf32> to vector<16x4xf32>
    %c4 = arith.constant 4 : index
    %c0_6 = arith.constant 0 : index
    %6 = vector.load %arg2[%c4, %c0_6] : memref<12x8xf32, #tpu.memory_space<vmem>>, vector<4x8xf32>
    %cst_7 = arith.constant dense<0.000000e+00> : vector<16x8xf32>
    %7 = tpu.matmul %5, %6, %cst_7 {dimension_numbers = #tpu.dot_dimension_numbers<[1], [0], [0], [1], [0, 0, 1, 1], [], []>} : vector<16x4xf32>, vector<4x8xf32>, vector<16x8xf32> -> vector<16x8xf32>
    %8 = arith.addf %3, %7 : vector<16x8xf32>
    %c0_8 = arith.constant 0 : index
    %c2 = arith.constant 2 : index
    %c0_9 = arith.constant 0 : index
    %9 = vector.load %arg1[%c0_8, %c2, %c0_9] : memref<1x18x4xf32, #tpu.memory_space<vmem>>, vector<1x16x4xf32>
    %10 = vector.shape_cast %9 : vector<1x16x4xf32> to vector<16x4xf32>
    %c8 = arith.constant 8 : index
    %c0_10 = arith.constant 0 : index
    %11 = vector.load %arg2[%c8, %c0_10] : memref<12x8xf32, #tpu.memory_space<vmem>>, vector<4x8xf32>
    %cst_11 = arith.constant dense<0.000000e+00> : vector<16x8xf32>
    %12 = tpu.matmul %10, %11, %cst_11 {dimension_numbers = #tpu.dot_dimension_numbers<[1], [0], [0], [1], [0, 0, 1, 1], [], []>} : vector<16x4xf32>, vector<4x8xf32>, vector<16x8xf32> -> vector<16x8xf32>
    %13 = arith.addf %8, %12 : vector<16x8xf32>
    %cst_12 = arith.constant dense<0.000000e+00> : vector<8xf32>
    %14 = vector.multi_reduction <add>, %13, %cst_12 [0] : vector<16x8xf32> to vector<8xf32>
    %15 = vector.shape_cast %14 : vector<8xf32> to vector<1x8xf32>
    %16 = arith.mulf %13, %13 : vector<16x8xf32>
    %cst_13 = arith.constant dense<0.000000e+00> : vector<8xf32>
    %17 = vector.multi_reduction <add>, %16, %cst_13 [0] : vector<16x8xf32> to vector<8xf32>
    %18 = vector.shape_cast %17 : vector<8xf32> to vector<1x8xf32>
    %19 = tpu.concatenate %15, %18 in 1 : vector<1x8xf32>, vector<1x8xf32> -> vector<1x16xf32>
    %20 = vector.shape_cast %19 : vector<1x16xf32> to vector<1x1x16xf32>
    %c0_14 = arith.constant 0 : index
    %c0_15 = arith.constant 0 : index
    %c0_16 = arith.constant 0 : index
    %21 = vector.load %arg3[%c0_14, %c0_15, %c0_16] : memref<1x1x16xf32, #tpu.memory_space<vmem>>, vector<1x1x16xf32>
    tpu.vector_store %arg3[%c0_14, %c0_15, %c0_16], %20 {strides = array<i32>} : memref<1x1x16xf32, #tpu.memory_space<vmem>>, vector<1x1x16xf32>,
    return
  }
  func.func @transform_0(%arg0: i32) -> (i32, i32, i32) {
    %c0_i32 = arith.constant 0 : i32
    %c0_i32_0 = arith.constant 0 : i32
    %c0_i32_1 = arith.constant 0 : i32
    return %arg0, %c0_i32, %c0_i32_0 : i32, i32, i32
  }
  func.func @transform_1(%arg0: i32) -> (i32, i32) {
    %c0_i32 = arith.constant 0 : i32
    %c0_i32_0 = arith.constant 0 : i32
    %c0_i32_1 = arith.constant 0 : i32
    return %c0_i32, %c0_i32_0 : i32, i32
  }
  func.func @transform_2(%arg0: i32) -> (i32, i32, i32) {
    %c0_i32 = arith.constant 0 : i32
    %c0_i32_0 = arith.constant 0 : i32
    %c0_i32_1 = arith.constant 0 : i32
    return %arg0, %c0_i32, %c0_i32_0 : i32, i32, i32
  }
}

</mosaic_0001>

<bundles_post_ra>
// kernel: tpu_custom_call.1
= control target key start
LH: loop header
LB: loop body
LE: loop exit
PB: predicated region body
PF: predicated region fallthrough
CT: control target
= control target key end

     0   :  { %7 = vsyncpa [#allocation3], 0  ;;  %s789_s0 = inlined_call_operand.vmem [shape: f32[2,18,4], index: 0, kind: input, shape index: {}]   ;;  %s790_s1 = inlined_call_operand.vmem [shape: f32[12,8], index: 1, kind: input, shape index: {}]   ;;  %s791_s2 = inlined_call_operand.hbm [shape: f32[2,1,16], index: 2, kind: output, shape index: {}]  }
   0x1   :  { %9 = vsyncpa [#allocation3 + $0x1], 0  ;;  %s669_s9 = smov 0   ;;  %s671_s10 = smov 0  }
   0x2   :  { %s673_s11 = smov 0   ;;  %s675_s12 = smov 0  }
   0x3 LB: > { %s690_s13 = sadd.s32 4294967295, %s650_s12   ;;  %s502_s14 = sadd.s32 4294967294, %s650_s12   ;;  %s650_s12 = sphi %s675_s12, %s797_s12   ;;  %s646_s11 = sphi %s673_s11, %s796_s11   ;;  %s642_s10 = sphi %s671_s10, %s795_s10   ;;  %s638_s9 = sphi %s669_s9, %s794_s9  }
   0x4   : > { %s694_s15 = sadd.s32 1, %s650_s12   ;;  %s69_s16 = sadd.s32 1, %s646_s11 }
   0x5   : > { %s66_s17 = ssub.s32 %s650_s12, %s694_s15  ;;  %p79_p0 = scmp.ne.s32.totalorder %s646_s11, %s642_s10 }
   0x6   : > { %p67_p1 = scmp.eq.s32.totalorder %s66_s17, 0  ;;  %p80_p2 = scmp.eq.s32.totalorder %s690_s13, 1 }
   0x7   : > { %p85_p3 = scmp.ne.s32.totalorder %s642_s10, %s638_s9  ;;  %p86_p4 = scmp.eq.s32.totalorder %s502_s14, 1 }
   0x8   : > { %s705_s18 = scalar_select %p67_p1, %s646_s11, %s69_s16  }
   0x9   : > { %p707_p5 = por %p80_p2, %p79_p0  ;;  %p711_p6 = por %p86_p4, %p85_p3 }
   0xa   : > { %p505_p7 = scmp.ge.s32.totalorder %s650_s12, 1  ;;  %p115_p8 = scmp.lt.s32.totalorder %s650_s12, 3 }
   0xc   : > { %p116_p9 = pnand %p505_p7, %p115_p8 }
   0xd   : > { %v143_v0 = vld [vmem:[%s790_s1] sm:$0xf] (!%p116_p9)  ;;  %vm154_vm0 = vcmask (!%p116_p9), 1043456   ;;  %p136_p10 = scmp.lt.s32.totalorder (!%p116_p9), %s690_s13, 1  ;;  %v319_v1 = vld [vmem:[%s790_s1 + $0x8] sm:$0xf] (!%p116_p9) }
   0xe   : > { %119 = sbr.rel (%p116_p9) target bundleno = 398 (0x18e), region = 28  ;;  %533 = vmatprep.subr.msk.mxu0 (!%p116_p9), %vm154_vm0, %v143_v0  ;;  %v146_v2 = vld [vmem:[%s790_s1 + $0x4] sm:$0xf] (!%p116_p9)  ;;  %vm147_vm1 = vcmask (!%p116_p9), 31744   ;;  %vm406_vm2 = vcmask (!%p116_p9), 64512   ;;  %s652_s4 = smov (!%p116_p9), 8  }
   0xf   : > { %534 = vmatpush3.msk.msra.mxu0 (!%p116_p9), %vm154_vm0, %v143_v0  ;;  %528 = vmatprep.subr.msk.mxu1 (!%p116_p9), %vm154_vm0, %v146_v2  ;;  %s134_s5 = sand.u32 (!%p116_p9), 1, %s642_s10   ;;  %s516_s6 = sshll.u32 (!%p116_p9), %s690_s13, 4  ;;  %vm432_vm3 = vcmask (!%p116_p9), 122880  }
  0x10   : > { %538 = vmatprep.subr.msk.mxu0 (!%p116_p9), %vm154_vm0, %v319_v1  ;;  %529 = vmatpush3.msk.msra.mxu1 (!%p116_p9), %vm154_vm0, %v146_v2  ;;  %s135_s7 = scalar_lea.vmem (!%p116_p9), [#allocation2], %s134_s5  ;;  %s746_s17 = scalar_lea.hbm (!%p116_p9), %s791_s2, %s516_s6 }
  0x11   : > { %s447_s8 = sshll.u32 (!%p116_p9), %s135_s7, 4  ;;  %s435_s21 = scalar_lea.sflag (!%p116_p9), [#allocation3], %s134_s5  ;;  %s748_s8 = int_to_ptr.vmem [resolvable:$true] %s447_s8 }
  0x12   : > { %s653_s22 = smov (!%p116_p9), [#allocation2]  }
  0x13   : > { %s592_s23 = sshll.u32 (!%p116_p9), %s653_s22, 4  ;;  %s593_s23 = int_to_ptr.vmem [resolvable:$false] %s592_s23 }
  0x14   : > { %s594_s24 = scalar_lea.vmem (!%p116_p9), %s593_s23, 32  ;;  %p595_p0 = scmp.lt.s32.totalorder (!%p116_p9), %s748_s8, %s593_s23 }
  0x15   : > { %s137_s27 = scalar_select %p136_p10, %s690_s13, 1 }
  0x16   : > { %s588_s13 = scalar_lea.vmem %s748_s8, 16 }
  0x17   : > { %s547_s28 = smul.u32 24, %s137_s27  ;;  %p589_p11 = scmp.ne.s32.totalorder %s748_s8, %s588_s13 }
  0x18   : > { %p596_p1 = scmp.lt.s32.totalorder %s594_s24, %s588_s13 }
  0x19   : > { %s140_s3 = scalar_lea.vmem %s789_s0, %s547_s28  ;;  %p590_p12 = pnand %p589_p11, %p707_p5 }
  0x1a   : > { %v141_v3 = vld [vmem:[%s140_s3] sm:$0xff]  ;;  %v142_v4 = vld [vmem:[%s140_s3 + $0x8] sm:$0xff]  ;;  %p597_p2 = por %p596_p1, %p595_p0 }
  0x1b   : > { %v144_v5 = vld [vmem:[%s140_s3 + $0x1] sm:$0xff]  ;;  %535 = vmatprep.mubr.msk.f32.mxu0 %vm147_vm1, %v141_v3  ;;  %v145_v6 = vld [vmem:[%s140_s3 + $0x9] sm:$0xff]  ;;  %p591_p13 = pneg %p590_p12 }
  0x1c   : > { %530 = vmatprep.mubr.msk.f32.mxu1 %vm147_vm1, %v144_v5  ;;  %v317_v7 = vld [vmem:[%s140_s3 + $0x2] sm:$0xff]  ;;  %536 = vmatmul.mubr.msk.f32.vlgmr.msra.gmra.mrb[0].mxu0 %vm147_vm1, %v142_v4  ;;  %v318_v8 = vld [vmem:[%s140_s3 + $0xa] sm:$0xff] }
  0x1d   : > { %531 = vmatmul.mubr.msk.f32.vlgmr.msra.gmra.mrb[0].mxu1 %vm147_vm1, %v145_v6  ;;  %539 = vmatpush3.msk.msra.mxu0 %vm154_vm0, %v319_v1  ;;  %p598_p3 = pnand %p597_p2, %p591_p13 }
  0x1e   : > { %540 = vmatprep.mubr.msk.f32.mxu0 %vm147_vm1, %v317_v7 }
  0x24   : > { %541 = vmatmul.mubr.msk.f32.vlgmr.msra.gmra.mrb[0].mxu0 %vm147_vm1, %v318_v8 }
  0xf0   : > { %v532_v9 = vpop.f32.mrb[0].mxu1 }
  0xf1   : > { %v224_v10 = vpop.f32.mrb[1].mxu1 }
  0xf7   : > { %v542_v11 = vpop.f32.mrb[0].mxu0 }
  0xf8   : > { %v543_v12 = vadd.f32 %v542_v11, %v532_v9  ;;  %v395_v13 = vpop.f32.mrb[1].mxu0 }
  0xf9   : > { %v544_v14 = vadd.f32 %v395_v13, %v224_v10 }
  0xfa   : > { %v408_v15 = vsel %vm406_vm2, %v543_v12, 0.0  ;;  %v417_v16 = vmul.f32 %v543_v12, %v543_v12 }
  0xfb   : > { %v407_v17 = vsel %vm406_vm2, %v544_v14, 0.0  ;;  %v416_v18 = vmul.f32 %v544_v14, %v544_v14 }
  0xfc   : > { %v419_v19 = vsel %vm406_vm2, %v417_v16, 0.0  ;;  %v409_v20 = vadd.f32 %v408_v15, %v407_v17 }
  0xfd   : > { %v418_v21 = vsel %vm406_vm2, %v416_v18, 0.0 }
  0xfe   : > { %v420_v22 = vadd.f32 %v419_v19, %v418_v21  ;;  %v410_v29 = vrot.slane %v409_v20, 4 }
 0x100   : > { %v421_v23 = vrot.slane %v420_v22, 4  ;;  %v411_v30 = vadd.f32 %v410_v29, %v409_v20 }
 0x102   : > { %v422_v24 = vadd.f32 %v421_v23, %v420_v22  ;;  %v412_v31 = vrot.slane %v411_v30, 2 }
 0x104   : > { %v423_v25 = vrot.slane %v422_v24, 2  ;;  %v413_v32 = vadd.f32 %v412_v31, %v411_v30 }
 0x106   : > { %v424_v26 = vadd.f32 %v423_v25, %v422_v24  ;;  %v414_v33 = vrot.slane %v413_v32, 1 }
 0x108   : > { %v425_v27 = vrot.slane %v424_v26, 1  ;;  %v415_v34 = vadd.f32 %v414_v33, %v413_v32 }
 0x10a   : > { %v426_v28 = vadd.f32 %v425_v27, %v424_v26 }
 0x10c   : > { %428 = vrot.lane.b32.xlu0 %v426_v28, %s652_s4 }
 0x17e   : > { %v429_v35 = vpop.permute.xlu0 %428 }
 0x17f   : > { %v431_v36 = vsel %vm406_vm2, %v415_v34, %v429_v35 }
 0x180   : > { %433 = vst.msk [vmem:[%s135_s7] sm:$0x1] %vm432_vm3, %v431_v36 }
 0x181   : > { %601 = shalt.err (!%p598_p3)
}
 0x182   : > { %s602_s25 = scalar_lea.hbm %s746_s17, 16  ;;  %s606_s28 = scalar_lea.hbm %s791_s2, 32 }
 0x183   : > { %p603_p4 = scmp.ne.s32.totalorder %s746_s17, %s602_s25  ;;  %p607_p9 = scmp.lt.u32.totalorder %s746_s17, %s791_s2 }
 0x184   : > { %p608_p10 = scmp.lt.u32.totalorder %s606_s28, %s602_s25  ;;  %p610_p12 = scmp.lt.u32.totalorder %s602_s25, %s746_s17 }
 0x185   : > { %p604_p7 = pnand %p603_p4, %p707_p5 }
 0x186   : > { %p609_p11 = por %p608_p10, %p607_p9 }
 0x187   : > { %p605_p8 = pneg %p604_p7 }
 0x188   : > { %p611_p13 = por %p610_p12, %p609_p11 }
 0x18a   : > { %p612_p0 = pnand %p611_p13, %p605_p8 }
 0x18c   : > { %615 = shalt.err (!%p612_p0)
}
 0x18d   : > { %548 = dma.vmem_to_hbm [thread:$0]  (%p707_p5), %s748_s8, 16, %s746_s17, %s435_s21  }
 0x18e PF: > { %p554_p1 = scmp.ge.s32.totalorder %s650_s12, 2  ;;  %s459_s3 = sand.u32 1, %s638_s9  }
 0x18f   : > { %s460_s4 = scalar_lea.sflag [#allocation3], %s459_s3 }
 0x190   : > { %p551_p2 = pnand %p554_p1, %p711_p6 }
 0x192   : > { %633 = dma.done.wait (!%p551_p2), %s460_s4, 16  }
 0x193   : > { %635 = vsyncadd (!%p551_p2), %s460_s4, 4294967280  ;;  %p12_p3 = scmp.ge.s32.totalorder %s694_s15, 4   ;;  %s794_s9 = smov %s642_s10 }
 0x194   : > { %s795_s10 = smov %s646_s11  ;;  %s796_s11 = smov %s705_s18 }
 0x195   : > { %s797_s12 = smov %s694_s15  ;;  %14 = sbr.rel (!%p12_p3) target bundleno = 3 (0x3), region = 63 }
 0x19c   :  { %464 = vsyncpa [#allocation3], 1 }
 0x19d   :  { %466 = vsyncpa [#allocation3 + $0x1], 1 }

</bundles_post_ra>
